<compile_context>
chip_gen: v6e
topology: v6e:2x2x1
jax: 0.10.0
libtpu: 0.0.40
codegen_flags: <defaults>
</compile_context>

<pallas_src>
import jax
import jax.numpy as jnp
from jax import lax
from jax.experimental import pallas as pl
from jax.experimental.pallas import tpu as pltpu
import numpy as np


def _make_decoder_kernel(H, W, C, Cout, NB, mm_dtype):
    HW = H * W
    L = NB * HW  # batch block folded onto the lane axis

    def kernel(pix_ref, xup_ref, iup_ref, enc_ref, w1_ref, b1_ref, w2_ref, b2_ref, out_ref):
        f32 = jnp.float32

        pos = pix_ref[0:1, :]       # (1, L) in-image flat pixel index (periodic per image)
        wcol = pix_ref[1:2, :]      # (1, L) in-image w coordinate

        # Fold the batch block onto lanes (lane-aligned concat: HW is a multiple of 128).
        xup = jnp.concatenate([xup_ref[n] for n in range(NB)], axis=1)   # (C, L)
        iup = jnp.concatenate([iup_ref[n] for n in range(NB)], axis=1)   # (C, L) int32
        enc = jnp.concatenate([enc_ref[n] for n in range(NB)], axis=1)   # (C, L)

        # ---- max_unpool2d(kernel=2, stride=2): one exact int32 compare + select ----
        # (upsampled indices equal the pixel's own flat index exactly at the argmax spot)
        unpooled = jnp.where(iup == pos, xup, jnp.zeros((), xup.dtype))  # (C, L)

        # ---- torch.cat([unpooled, feat_encoder], dim=1): sublane concat ----
        feat = jnp.concatenate([unpooled, enc], axis=0)                  # (2C, L)

        # ---- constant border-validity masks, built ONCE, reused by both convs ----
        top_ok = pos >= W
        bot_ok = pos < HW - W
        left_ok = wcol >= 1
        right_ok = wcol < W - 1
        row_ok = (top_ok, None, bot_ok)
        col_ok = (left_ok, None, right_ok)

        def _and(a, b):
            if a is None:
                return b
            if b is None:
                return a
            return jnp.logical_and(a, b)

        tap_masks = [_and(row_ok[dh], col_ok[dw]) for dh in range(3) for dw in range(3)]

        # ---- 3x3 "same" conv + bias + ReLU: one MXU matmul over an im2col patch whose
        #      taps are XLU lane rolls + precomputed border masks.  Folding the batch on
        #      lanes is safe: every cross-image wrap position is a masked border pixel. ----
        def conv3x3_relu(xin, w_ref, b_ref):
            taps = []
            t = 0
            for dh in range(3):
                for dw in range(3):
                    s = (dh - 1) * W + (dw - 1)                   # flat source shift
                    shifted = xin if s == 0 else pltpu.roll(xin, shift=(-s) % L, axis=1)
                    m = tap_masks[t]
                    taps.append(shifted if m is None else
                                jnp.where(m, shifted, jnp.zeros((), shifted.dtype)))
                    t += 1
            patch = jnp.concatenate(taps, axis=0).astype(mm_dtype)       # (9*Cin, L)
            y = jnp.dot(w_ref[...].astype(mm_dtype), patch,
                        preferred_element_type=f32)                      # (Cout, L) f32
            return jnp.maximum(y + b_ref[...], 0.0)

        h1 = conv3x3_relu(feat, w1_ref, b1_ref)                          # (Cout, L)
        y2 = conv3x3_relu(h1, w2_ref, b2_ref)                            # (Cout, L)

        # Per-image lane-aligned writeback into the (NB, Cout, HW) output block.
        for n in range(NB):
            out_ref[n] = y2[:, n * HW:(n + 1) * HW].astype(out_ref.dtype)

    return kernel


def decoder_forward(x, indices, feat_encoder, w1, b1, w2, b2, *,
                    use_bf16=False, batch_block=None):
    """Pallas implementation of _Decoder.forward.

    x            : (N, C, H/2, W/2) float32  pooled features (NCHW)
    indices      : (N, C, H/2, W/2) int      flat argmax indices into H*W (from max_pool2d)
    feat_encoder : (N, C, H, W)     float32  skip connection (NCHW) -- defines `size`
    w1           : (3, 3, 2C, Cout) float32  (HWIO)
    b1           : (Cout,)
    w2           : (3, 3, Cout, Cout) float32 (HWIO)
    b2           : (Cout,)
    returns      : (N, Cout, H, W) float32 (NCHW)
    """
    N, C, Hh, Wh = x.shape
    H, W = feat_encoder.shape[2], feat_encoder.shape[3]
    assert H == 2 * Hh and W == 2 * Wh, "kernel supports output_size == 2 * pooled size"
    assert H * W < 2 ** 31, "flat unpool indices must fit int32"
    Cout = w1.shape[-1]
    HW = H * W

    NB = N if batch_block is None else batch_block
    assert N % NB == 0, "batch_block must divide N"

    cdt = jnp.bfloat16 if use_bf16 else jnp.float32      # activation/HBM dtype
    mm_dtype = jnp.bfloat16 if use_bf16 else jnp.float32  # MXU operand dtype (f32 acc)

    # Pre-upsampled (2x2 NN) value / index planes -> in-kernel unpool is a single exact
    # int32 compare + select (replaces the O(HW^2) scatter matmuls of the old version).
    # Pure layout plumbing done once by XLA; reshapes to planar (N, C, H*W) are free.
    x_up = jnp.repeat(jnp.repeat(x, 2, axis=2), 2, axis=3).reshape(N, C, HW).astype(cdt)
    idx_up = jnp.repeat(jnp.repeat(indices.astype(jnp.int32), 2, axis=2),
                        2, axis=3).reshape(N, C, HW)
    enc = feat_encoder.reshape(N, C, HW).astype(cdt)

    # Tiny constant index planes (int div/mod done once here, never in the kernel); they
    # are periodic per image so one (2, NB*HW) plane serves every batch block.
    q = jnp.arange(HW, dtype=jnp.int32)
    pix = jnp.stack([jnp.tile(q, NB), jnp.tile(q % W, NB)], axis=0)      # (2, NB*HW)

    # Conv weights as (Cout, 9*Cin), tap-major rows (kh, kw, cin); bias applied
    # post-matmul so K = 72 / 36 (no ones-row, no bias fold).
    w1m = jnp.asarray(w1, jnp.float32).reshape(9 * 2 * C, Cout).T.astype(mm_dtype)
    w2m = jnp.asarray(w2, jnp.float32).reshape(9 * Cout, Cout).T.astype(mm_dtype)
    b1m = jnp.asarray(b1, jnp.float32).reshape(Cout, 1)
    b2m = jnp.asarray(b2, jnp.float32).reshape(Cout, 1)

    kernel = _make_decoder_kernel(H, W, C, Cout, NB, mm_dtype)
    out = pl.pallas_call(
        kernel,
        out_shape=jax.ShapeDtypeStruct((N, Cout, HW), jnp.float32),
        grid_spec=pltpu.PrefetchScalarGridSpec(
            num_scalar_prefetch=0,
            grid=(N // NB,),
            in_specs=[
                pl.BlockSpec((2, NB * HW), lambda nb: (0, 0)),            # pos / wcol planes
                pl.BlockSpec((NB, C, HW), lambda nb: (nb, 0, 0)),         # upsampled values
                pl.BlockSpec((NB, C, HW), lambda nb: (nb, 0, 0)),         # upsampled indices
                pl.BlockSpec((NB, C, HW), lambda nb: (nb, 0, 0)),         # encoder skip
                pl.BlockSpec((Cout, 9 * 2 * C), lambda nb: (0, 0)),       # conv1 W
                pl.BlockSpec((Cout, 1), lambda nb: (0, 0)),               # conv1 b
                pl.BlockSpec((Cout, 9 * Cout), lambda nb: (0, 0)),        # conv2 W
                pl.BlockSpec((Cout, 1), lambda nb: (0, 0)),               # conv2 b
            ],
            out_specs=pl.BlockSpec((NB, Cout, HW), lambda nb: (nb, 0, 0)),
        ),
        compiler_params=pltpu.CompilerParams(
            dimension_semantics=("parallel",),
            # Explicit scoped-VMEM ceiling (v5e default is only 16 MiB); kept <= ~48 MiB
            # so the same setting is safe on v7x's 64 MiB VMEM.
            vmem_limit_bytes=48 * 1024 * 1024,
        ),
    )(pix, x_up, idx_up, enc, w1m, b1m, w2m, b2m)

    # (N, Cout, H*W) -> NCHW with a free reshape (no transpose needed).
    return out.reshape(N, Cout, H, W)


def reference_forward(x, indices, feat_encoder, w1, b1, w2, b2):
    """Pure-JAX reference mirroring the PyTorch module (for verification)."""
    N, C, Hh, Wh = x.shape
    H, W = feat_encoder.shape[2], feat_encoder.shape[3]
    x_up = jnp.repeat(jnp.repeat(x, 2, axis=2), 2, axis=3)
    idx_up = jnp.repeat(jnp.repeat(indices, 2, axis=2), 2, axis=3)
    pos = (jnp.arange(H)[:, None] * W + jnp.arange(W)[None, :]).astype(idx_up.dtype)
    unpooled = jnp.where(idx_up == pos[None, None], x_up, 0.0)
    feat = jnp.concatenate([unpooled, feat_encoder], axis=1)

    def conv_relu(xin, w, b):
        y = lax.conv_general_dilated(
            xin, w, window_strides=(1, 1), padding=((1, 1), (1, 1)),
            dimension_numbers=("NCHW", "HWIO", "NCHW"))
        return jnp.maximum(y + b.reshape(1, -1, 1, 1), 0.0)

    h = conv_relu(feat, w1, b1)
    return conv_relu(h, w2, b2)


if __name__ == "__main__":
    # _Decoder(n_in_feat=4, n_out_feat=4); skip feature at 16x16, pooled input at 8x8.
    N, C, Cout = 2, 4, 4
    H = W = 16
    Hh, Wh = H // 2, W // 2

    key = jax.random.PRNGKey(0)
    k_x, k_di, k_dj, k_enc, k_w1, k_b1, k_w2, k_b2 = jax.random.split(key, 8)

    x = jax.random.normal(k_x, (N, C, Hh, Wh), dtype=jnp.float32)
    # Valid max-pool indices: each pooled cell points into its own 2x2 window of the HxW
    # plane (max_pool2d guarantees this, which is why the unpool select has no ties).
    di = jax.random.randint(k_di, (N, C, Hh, Wh), 0, 2)
    dj = jax.random.randint(k_dj, (N, C, Hh, Wh), 0, 2)
    ii = jnp.arange(Hh)[None, None, :, None]
    jj = jnp.arange(Wh)[None, None, None, :]
    indices = ((2 * ii + di) * W + (2 * jj + dj)).astype(jnp.int32)

    feat_encoder = jax.random.normal(k_enc, (N, C, H, W), dtype=jnp.float32)

    # Deterministic synthetic parameters (HWIO layout).
    w1 = 0.1 * jax.random.normal(k_w1, (3, 3, 2 * C, Cout), dtype=jnp.float32)
    b1 = 0.1 * jax.random.normal(k_b1, (Cout,), dtype=jnp.float32)
    w2 = 0.1 * jax.random.normal(k_w2, (3, 3, Cout, Cout), dtype=jnp.float32)
    b2 = 0.1 * jax.random.normal(k_b2, (Cout,), dtype=jnp.float32)

    out = decoder_forward(x, indices, feat_encoder, w1, b1, w2, b2)
    out = jax.block_until_ready(out)

    ref = jax.block_until_ready(reference_forward(x, indices, feat_encoder, w1, b1, w2, b2))
    np.testing.assert_allclose(np.asarray(out), np.asarray(ref), rtol=1e-2, atol=1e-2)
    assert out.shape == (N, Cout, H, W)

    print("KERNEL_OK")
</pallas_src>

<mosaic_0001>
module attributes {stable_mosaic.version = 11 : i64} {
  func.func @kernel(%arg0: i32, %arg1: memref<2x512xi32, #tpu.memory_space<vmem>>, %arg2: memref<2x4x256xf32, #tpu.memory_space<vmem>>, %arg3: memref<2x4x256xi32, #tpu.memory_space<vmem>>, %arg4: memref<2x4x256xf32, #tpu.memory_space<vmem>>, %arg5: memref<4x72xf32, #tpu.memory_space<vmem>>, %arg6: memref<4x1xf32, #tpu.memory_space<vmem>>, %arg7: memref<4x36xf32, #tpu.memory_space<vmem>>, %arg8: memref<4x1xf32, #tpu.memory_space<vmem>>, %arg9: memref<2x4x256xf32, #tpu.memory_space<vmem>>) attributes {dimension_semantics = [#tpu.dimension_semantics<parallel>], iteration_bounds = array<i64: 1>, scalar_prefetch = 0 : i64, scratch_operands = 0 : i64, tpu.core_type = #tpu.core_type<tc>, window_params = [{pipeline_mode = #tpu.pipeline_mode<synchronous>, transform_indices = @transform_0, window_bounds = array<i64: 2, 512>}, {transform_indices = @transform_1, window_bounds = array<i64: 2, 4, 256>}, {transform_indices = @transform_2, window_bounds = array<i64: 2, 4, 256>}, {transform_indices = @transform_3, window_bounds = array<i64: 2, 4, 256>}, {pipeline_mode = #tpu.pipeline_mode<synchronous>, transform_indices = @transform_4, window_bounds = array<i64: 4, 72>}, {pipeline_mode = #tpu.pipeline_mode<synchronous>, transform_indices = @transform_5, window_bounds = array<i64: 4, 1>}, {pipeline_mode = #tpu.pipeline_mode<synchronous>, transform_indices = @transform_6, window_bounds = array<i64: 4, 36>}, {pipeline_mode = #tpu.pipeline_mode<synchronous>, transform_indices = @transform_7, window_bounds = array<i64: 4, 1>}, {transform_indices = @transform_8, window_bounds = array<i64: 2, 4, 256>}]} {
    %c0 = arith.constant 0 : index
    %c0_0 = arith.constant 0 : index
    %0 = vector.load %arg1[%c0, %c0_0] : memref<2x512xi32, #tpu.memory_space<vmem>>, vector<1x512xi32>
    %c1 = arith.constant 1 : index
    %c0_1 = arith.constant 0 : index
    %1 = vector.load %arg1[%c1, %c0_1] : memref<2x512xi32, #tpu.memory_space<vmem>>, vector<1x512xi32>
    %c0_2 = arith.constant 0 : index
    %c0_3 = arith.constant 0 : index
    %c0_4 = arith.constant 0 : index
    %2 = vector.load %arg2[%c0_2, %c0_3, %c0_4] : memref<2x4x256xf32, #tpu.memory_space<vmem>>, vector<1x4x256xf32>
    %3 = vector.shape_cast %2 : vector<1x4x256xf32> to vector<4x256xf32>
    %c1_5 = arith.constant 1 : index
    %c0_6 = arith.constant 0 : index
    %c0_7 = arith.constant 0 : index
    %4 = vector.load %arg2[%c1_5, %c0_6, %c0_7] : memref<2x4x256xf32, #tpu.memory_space<vmem>>, vector<1x4x256xf32>
    %5 = vector.shape_cast %4 : vector<1x4x256xf32> to vector<4x256xf32>
    %6 = tpu.concatenate %3, %5 in 1 : vector<4x256xf32>, vector<4x256xf32> -> vector<4x512xf32>
    %c0_8 = arith.constant 0 : index
    %c0_9 = arith.constant 0 : index
    %c0_10 = arith.constant 0 : index
    %7 = vector.load %arg3[%c0_8, %c0_9, %c0_10] : memref<2x4x256xi32, #tpu.memory_space<vmem>>, vector<1x4x256xi32>
    %8 = vector.shape_cast %7 : vector<1x4x256xi32> to vector<4x256xi32>
    %c1_11 = arith.constant 1 : index
    %c0_12 = arith.constant 0 : index
    %c0_13 = arith.constant 0 : index
    %9 = vector.load %arg3[%c1_11, %c0_12, %c0_13] : memref<2x4x256xi32, #tpu.memory_space<vmem>>, vector<1x4x256xi32>
    %10 = vector.shape_cast %9 : vector<1x4x256xi32> to vector<4x256xi32>
    %11 = tpu.concatenate %8, %10 in 1 : vector<4x256xi32>, vector<4x256xi32> -> vector<4x512xi32>
    %c0_14 = arith.constant 0 : index
    %c0_15 = arith.constant 0 : index
    %c0_16 = arith.constant 0 : index
    %12 = vector.load %arg4[%c0_14, %c0_15, %c0_16] : memref<2x4x256xf32, #tpu.memory_space<vmem>>, vector<1x4x256xf32>
    %13 = vector.shape_cast %12 : vector<1x4x256xf32> to vector<4x256xf32>
    %c1_17 = arith.constant 1 : index
    %c0_18 = arith.constant 0 : index
    %c0_19 = arith.constant 0 : index
    %14 = vector.load %arg4[%c1_17, %c0_18, %c0_19] : memref<2x4x256xf32, #tpu.memory_space<vmem>>, vector<1x4x256xf32>
    %15 = vector.shape_cast %14 : vector<1x4x256xf32> to vector<4x256xf32>
    %16 = tpu.concatenate %13, %15 in 1 : vector<4x256xf32>, vector<4x256xf32> -> vector<4x512xf32>
    %17 = vector.broadcast %0 : vector<1x512xi32> to vector<4x512xi32>
    %18 = arith.cmpi eq, %11, %17 : vector<4x512xi32>
    %cst = arith.constant 0.000000e+00 : f32
    %19 = vector.broadcast %cst : f32 to vector<4x512xf32>
    %20 = arith.select %18, %6, %19 : vector<4x512xi1>, vector<4x512xf32>
    %21 = tpu.concatenate %20, %16 in 0 : vector<4x512xf32>, vector<4x512xf32> -> vector<8x512xf32>
    %c16_i32 = arith.constant 16 : i32
    %22 = vector.broadcast %c16_i32 : i32 to vector<1x512xi32>
    %23 = arith.cmpi sge, %0, %22 : vector<1x512xi32>
    %c240_i32 = arith.constant 240 : i32
    %24 = vector.broadcast %c240_i32 : i32 to vector<1x512xi32>
    %25 = arith.cmpi slt, %0, %24 : vector<1x512xi32>
    %c1_i32 = arith.constant 1 : i32
    %26 = vector.broadcast %c1_i32 : i32 to vector<1x512xi32>
    %27 = arith.cmpi sge, %1, %26 : vector<1x512xi32>
    %c15_i32 = arith.constant 15 : i32
    %28 = vector.broadcast %c15_i32 : i32 to vector<1x512xi32>
    %29 = arith.cmpi slt, %1, %28 : vector<1x512xi32>
    %30 = arith.andi %23, %27 : vector<1x512xi1>
    %31 = arith.andi %23, %29 : vector<1x512xi1>
    %32 = arith.andi %25, %27 : vector<1x512xi1>
    %33 = arith.andi %25, %29 : vector<1x512xi1>
    %c17_i32 = arith.constant 17 : i32
    %34 = tpu.dynamic_rotate %21 by %c17_i32 dim 1 : vector<8x512xf32>, i32 -> vector<8x512xf32>
    %cst_20 = arith.constant 0.000000e+00 : f32
    %35 = vector.shape_cast %30 : vector<1x512xi1> to vector<1x512xi1>
    %36 = vector.broadcast %35 : vector<1x512xi1> to vector<8x512xi1>
    %37 = vector.broadcast %cst_20 : f32 to vector<8x512xf32>
    %38 = arith.select %36, %34, %37 : vector<8x512xi1>, vector<8x512xf32>
    %c16_i32_21 = arith.constant 16 : i32
    %39 = tpu.dynamic_rotate %21 by %c16_i32_21 dim 1 : vector<8x512xf32>, i32 -> vector<8x512xf32>
    %cst_22 = arith.constant 0.000000e+00 : f32
    %40 = vector.shape_cast %23 : vector<1x512xi1> to vector<1x512xi1>
    %41 = vector.broadcast %40 : vector<1x512xi1> to vector<8x512xi1>
    %42 = vector.broadcast %cst_22 : f32 to vector<8x512xf32>
    %43 = arith.select %41, %39, %42 : vector<8x512xi1>, vector<8x512xf32>
    %c15_i32_23 = arith.constant 15 : i32
    %44 = tpu.dynamic_rotate %21 by %c15_i32_23 dim 1 : vector<8x512xf32>, i32 -> vector<8x512xf32>
    %cst_24 = arith.constant 0.000000e+00 : f32
    %45 = vector.shape_cast %31 : vector<1x512xi1> to vector<1x512xi1>
    %46 = vector.broadcast %45 : vector<1x512xi1> to vector<8x512xi1>
    %47 = vector.broadcast %cst_24 : f32 to vector<8x512xf32>
    %48 = arith.select %46, %44, %47 : vector<8x512xi1>, vector<8x512xf32>
    %c1_i32_25 = arith.constant 1 : i32
    %49 = tpu.dynamic_rotate %21 by %c1_i32_25 dim 1 : vector<8x512xf32>, i32 -> vector<8x512xf32>
    %cst_26 = arith.constant 0.000000e+00 : f32
    %50 = vector.shape_cast %27 : vector<1x512xi1> to vector<1x512xi1>
    %51 = vector.broadcast %50 : vector<1x512xi1> to vector<8x512xi1>
    %52 = vector.broadcast %cst_26 : f32 to vector<8x512xf32>
    %53 = arith.select %51, %49, %52 : vector<8x512xi1>, vector<8x512xf32>
    %c511_i32 = arith.constant 511 : i32
    %54 = tpu.dynamic_rotate %21 by %c511_i32 dim 1 : vector<8x512xf32>, i32 -> vector<8x512xf32>
    %cst_27 = arith.constant 0.000000e+00 : f32
    %55 = vector.shape_cast %29 : vector<1x512xi1> to vector<1x512xi1>
    %56 = vector.broadcast %55 : vector<1x512xi1> to vector<8x512xi1>
    %57 = vector.broadcast %cst_27 : f32 to vector<8x512xf32>
    %58 = arith.select %56, %54, %57 : vector<8x512xi1>, vector<8x512xf32>
    %c497_i32 = arith.constant 497 : i32
    %59 = tpu.dynamic_rotate %21 by %c497_i32 dim 1 : vector<8x512xf32>, i32 -> vector<8x512xf32>
    %cst_28 = arith.constant 0.000000e+00 : f32
    %60 = vector.shape_cast %32 : vector<1x512xi1> to vector<1x512xi1>
    %61 = vector.broadcast %60 : vector<1x512xi1> to vector<8x512xi1>
    %62 = vector.broadcast %cst_28 : f32 to vector<8x512xf32>
    %63 = arith.select %61, %59, %62 : vector<8x512xi1>, vector<8x512xf32>
    %c496_i32 = arith.constant 496 : i32
    %64 = tpu.dynamic_rotate %21 by %c496_i32 dim 1 : vector<8x512xf32>, i32 -> vector<8x512xf32>
    %cst_29 = arith.constant 0.000000e+00 : f32
    %65 = vector.shape_cast %25 : vector<1x512xi1> to vector<1x512xi1>
    %66 = vector.broadcast %65 : vector<1x512xi1> to vector<8x512xi1>
    %67 = vector.broadcast %cst_29 : f32 to vector<8x512xf32>
    %68 = arith.select %66, %64, %67 : vector<8x512xi1>, vector<8x512xf32>
    %c495_i32 = arith.constant 495 : i32
    %69 = tpu.dynamic_rotate %21 by %c495_i32 dim 1 : vector<8x512xf32>, i32 -> vector<8x512xf32>
    %cst_30 = arith.constant 0.000000e+00 : f32
    %70 = vector.shape_cast %33 : vector<1x512xi1> to vector<1x512xi1>
    %71 = vector.broadcast %70 : vector<1x512xi1> to vector<8x512xi1>
    %72 = vector.broadcast %cst_30 : f32 to vector<8x512xf32>
    %73 = arith.select %71, %69, %72 : vector<8x512xi1>, vector<8x512xf32>
    %74 = tpu.concatenate %38, %43, %48, %53, %21, %58, %63, %68, %73 in 0 : vector<8x512xf32>, vector<8x512xf32>, vector<8x512xf32>, vector<8x512xf32>, vector<8x512xf32>, vector<8x512xf32>, vector<8x512xf32>, vector<8x512xf32>, vector<8x512xf32> -> vector<72x512xf32>
    %c0_31 = arith.constant 0 : index
    %c0_32 = arith.constant 0 : index
    %75 = vector.load %arg5[%c0_31, %c0_32] : memref<4x72xf32, #tpu.memory_space<vmem>>, vector<4x72xf32>
    %cst_33 = arith.constant dense<0.000000e+00> : vector<4x512xf32>
    %76 = tpu.matmul %75, %74, %cst_33 {dimension_numbers = #tpu.dot_dimension_numbers<[1], [0], [0], [1], [0, 0, 1, 1], [], []>} : vector<4x72xf32>, vector<72x512xf32>, vector<4x512xf32> -> vector<4x512xf32>
    %c0_34 = arith.constant 0 : index
    %c0_35 = arith.constant 0 : index
    %77 = vector.load %arg6[%c0_34, %c0_35] : memref<4x1xf32, #tpu.memory_space<vmem>>, vector<4x1xf32>
    %78 = vector.broadcast %77 : vector<4x1xf32> to vector<4x512xf32>
    %79 = arith.addf %76, %78 : vector<4x512xf32>
    %cst_36 = arith.constant 0.000000e+00 : f32
    %80 = vector.broadcast %cst_36 : f32 to vector<4x512xf32>
    %81 = arith.maximumf %79, %80 : vector<4x512xf32>
    %c17_i32_37 = arith.constant 17 : i32
    %82 = tpu.dynamic_rotate %81 by %c17_i32_37 dim 1 : vector<4x512xf32>, i32 -> vector<4x512xf32>
    %cst_38 = arith.constant 0.000000e+00 : f32
    %83 = vector.shape_cast %30 : vector<1x512xi1> to vector<1x512xi1>
    %84 = vector.broadcast %83 : vector<1x512xi1> to vector<4x512xi1>
    %85 = vector.broadcast %cst_38 : f32 to vector<4x512xf32>
    %86 = arith.select %84, %82, %85 : vector<4x512xi1>, vector<4x512xf32>
    %c16_i32_39 = arith.constant 16 : i32
    %87 = tpu.dynamic_rotate %81 by %c16_i32_39 dim 1 : vector<4x512xf32>, i32 -> vector<4x512xf32>
    %cst_40 = arith.constant 0.000000e+00 : f32
    %88 = vector.shape_cast %23 : vector<1x512xi1> to vector<1x512xi1>
    %89 = vector.broadcast %88 : vector<1x512xi1> to vector<4x512xi1>
    %90 = vector.broadcast %cst_40 : f32 to vector<4x512xf32>
    %91 = arith.select %89, %87, %90 : vector<4x512xi1>, vector<4x512xf32>
    %c15_i32_41 = arith.constant 15 : i32
    %92 = tpu.dynamic_rotate %81 by %c15_i32_41 dim 1 : vector<4x512xf32>, i32 -> vector<4x512xf32>
    %cst_42 = arith.constant 0.000000e+00 : f32
    %93 = vector.shape_cast %31 : vector<1x512xi1> to vector<1x512xi1>
    %94 = vector.broadcast %93 : vector<1x512xi1> to vector<4x512xi1>
    %95 = vector.broadcast %cst_42 : f32 to vector<4x512xf32>
    %96 = arith.select %94, %92, %95 : vector<4x512xi1>, vector<4x512xf32>
    %c1_i32_43 = arith.constant 1 : i32
    %97 = tpu.dynamic_rotate %81 by %c1_i32_43 dim 1 : vector<4x512xf32>, i32 -> vector<4x512xf32>
    %cst_44 = arith.constant 0.000000e+00 : f32
    %98 = vector.shape_cast %27 : vector<1x512xi1> to vector<1x512xi1>
    %99 = vector.broadcast %98 : vector<1x512xi1> to vector<4x512xi1>
    %100 = vector.broadcast %cst_44 : f32 to vector<4x512xf32>
    %101 = arith.select %99, %97, %100 : vector<4x512xi1>, vector<4x512xf32>
    %c511_i32_45 = arith.constant 511 : i32
    %102 = tpu.dynamic_rotate %81 by %c511_i32_45 dim 1 : vector<4x512xf32>, i32 -> vector<4x512xf32>
    %cst_46 = arith.constant 0.000000e+00 : f32
    %103 = vector.shape_cast %29 : vector<1x512xi1> to vector<1x512xi1>
    %104 = vector.broadcast %103 : vector<1x512xi1> to vector<4x512xi1>
    %105 = vector.broadcast %cst_46 : f32 to vector<4x512xf32>
    %106 = arith.select %104, %102, %105 : vector<4x512xi1>, vector<4x512xf32>
    %c497_i32_47 = arith.constant 497 : i32
    %107 = tpu.dynamic_rotate %81 by %c497_i32_47 dim 1 : vector<4x512xf32>, i32 -> vector<4x512xf32>
    %cst_48 = arith.constant 0.000000e+00 : f32
    %108 = vector.shape_cast %32 : vector<1x512xi1> to vector<1x512xi1>
    %109 = vector.broadcast %108 : vector<1x512xi1> to vector<4x512xi1>
    %110 = vector.broadcast %cst_48 : f32 to vector<4x512xf32>
    %111 = arith.select %109, %107, %110 : vector<4x512xi1>, vector<4x512xf32>
    %c496_i32_49 = arith.constant 496 : i32
    %112 = tpu.dynamic_rotate %81 by %c496_i32_49 dim 1 : vector<4x512xf32>, i32 -> vector<4x512xf32>
    %cst_50 = arith.constant 0.000000e+00 : f32
    %113 = vector.shape_cast %25 : vector<1x512xi1> to vector<1x512xi1>
    %114 = vector.broadcast %113 : vector<1x512xi1> to vector<4x512xi1>
    %115 = vector.broadcast %cst_50 : f32 to vector<4x512xf32>
    %116 = arith.select %114, %112, %115 : vector<4x512xi1>, vector<4x512xf32>
    %c495_i32_51 = arith.constant 495 : i32
    %117 = tpu.dynamic_rotate %81 by %c495_i32_51 dim 1 : vector<4x512xf32>, i32 -> vector<4x512xf32>
    %cst_52 = arith.constant 0.000000e+00 : f32
    %118 = vector.shape_cast %33 : vector<1x512xi1> to vector<1x512xi1>
    %119 = vector.broadcast %118 : vector<1x512xi1> to vector<4x512xi1>
    %120 = vector.broadcast %cst_52 : f32 to vector<4x512xf32>
    %121 = arith.select %119, %117, %120 : vector<4x512xi1>, vector<4x512xf32>
    %122 = tpu.concatenate %86, %91, %96, %101, %81, %106, %111, %116, %121 in 0 : vector<4x512xf32>, vector<4x512xf32>, vector<4x512xf32>, vector<4x512xf32>, vector<4x512xf32>, vector<4x512xf32>, vector<4x512xf32>, vector<4x512xf32>, vector<4x512xf32> -> vector<36x512xf32>
    %c0_53 = arith.constant 0 : index
    %c0_54 = arith.constant 0 : index
    %123 = vector.load %arg7[%c0_53, %c0_54] : memref<4x36xf32, #tpu.memory_space<vmem>>, vector<4x36xf32>
    %cst_55 = arith.constant dense<0.000000e+00> : vector<4x512xf32>
    %124 = tpu.matmul %123, %122, %cst_55 {dimension_numbers = #tpu.dot_dimension_numbers<[1], [0], [0], [1], [0, 0, 1, 1], [], []>} : vector<4x36xf32>, vector<36x512xf32>, vector<4x512xf32> -> vector<4x512xf32>
    %c0_56 = arith.constant 0 : index
    %c0_57 = arith.constant 0 : index
    %125 = vector.load %arg8[%c0_56, %c0_57] : memref<4x1xf32, #tpu.memory_space<vmem>>, vector<4x1xf32>
    %126 = vector.broadcast %125 : vector<4x1xf32> to vector<4x512xf32>
    %127 = arith.addf %124, %126 : vector<4x512xf32>
    %cst_58 = arith.constant 0.000000e+00 : f32
    %128 = vector.broadcast %cst_58 : f32 to vector<4x512xf32>
    %129 = arith.maximumf %127, %128 : vector<4x512xf32>
    %130 = vector.extract_strided_slice %129 {offsets = [0, 0], sizes = [4, 256], strides = [1, 1]} : vector<4x512xf32> to vector<4x256xf32>
    %c0_59 = arith.constant 0 : index
    %c0_60 = arith.constant 0 : index
    %c0_61 = arith.constant 0 : index
    %131 = vector.load %arg9[%c0_59, %c0_60, %c0_61] : memref<2x4x256xf32, #tpu.memory_space<vmem>>, vector<1x4x256xf32>
    %132 = vector.shape_cast %131 : vector<1x4x256xf32> to vector<4x256xf32>
    %133 = vector.shape_cast %130 : vector<4x256xf32> to vector<1x4x256xf32>
    tpu.vector_store %arg9[%c0_59, %c0_60, %c0_61], %133 {strides = array<i32>} : memref<2x4x256xf32, #tpu.memory_space<vmem>>, vector<1x4x256xf32>,
    %134 = vector.extract_strided_slice %129 {offsets = [0, 256], sizes = [4, 256], strides = [1, 1]} : vector<4x512xf32> to vector<4x256xf32>
    %c1_62 = arith.constant 1 : index
    %c0_63 = arith.constant 0 : index
    %c0_64 = arith.constant 0 : index
    %135 = vector.load %arg9[%c1_62, %c0_63, %c0_64] : memref<2x4x256xf32, #tpu.memory_space<vmem>>, vector<1x4x256xf32>
    %136 = vector.shape_cast %135 : vector<1x4x256xf32> to vector<4x256xf32>
    %137 = vector.shape_cast %134 : vector<4x256xf32> to vector<1x4x256xf32>
    tpu.vector_store %arg9[%c1_62, %c0_63, %c0_64], %137 {strides = array<i32>} : memref<2x4x256xf32, #tpu.memory_space<vmem>>, vector<1x4x256xf32>,
    return
  }
  func.func @transform_0(%arg0: i32) -> (i32, i32) {
    %c0_i32 = arith.constant 0 : i32
    %c0_i32_0 = arith.constant 0 : i32
    %c0_i32_1 = arith.constant 0 : i32
    return %c0_i32, %c0_i32_0 : i32, i32
  }
  func.func @transform_1(%arg0: i32) -> (i32, i32, i32) {
    %c0_i32 = arith.constant 0 : i32
    %c0_i32_0 = arith.constant 0 : i32
    %c0_i32_1 = arith.constant 0 : i32
    return %arg0, %c0_i32, %c0_i32_0 : i32, i32, i32
  }
  func.func @transform_2(%arg0: i32) -> (i32, i32, i32) {
    %c0_i32 = arith.constant 0 : i32
    %c0_i32_0 = arith.constant 0 : i32
    %c0_i32_1 = arith.constant 0 : i32
    return %arg0, %c0_i32, %c0_i32_0 : i32, i32, i32
  }
  func.func @transform_3(%arg0: i32) -> (i32, i32, i32) {
    %c0_i32 = arith.constant 0 : i32
    %c0_i32_0 = arith.constant 0 : i32
    %c0_i32_1 = arith.constant 0 : i32
    return %arg0, %c0_i32, %c0_i32_0 : i32, i32, i32
  }
  func.func @transform_4(%arg0: i32) -> (i32, i32) {
    %c0_i32 = arith.constant 0 : i32
    %c0_i32_0 = arith.constant 0 : i32
    %c0_i32_1 = arith.constant 0 : i32
    return %c0_i32, %c0_i32_0 : i32, i32
  }
  func.func @transform_5(%arg0: i32) -> (i32, i32) {
    %c0_i32 = arith.constant 0 : i32
    %c0_i32_0 = arith.constant 0 : i32
    %c0_i32_1 = arith.constant 0 : i32
    return %c0_i32, %c0_i32_0 : i32, i32
  }
  func.func @transform_6(%arg0: i32) -> (i32, i32) {
    %c0_i32 = arith.constant 0 : i32
    %c0_i32_0 = arith.constant 0 : i32
    %c0_i32_1 = arith.constant 0 : i32
    return %c0_i32, %c0_i32_0 : i32, i32
  }
  func.func @transform_7(%arg0: i32) -> (i32, i32) {
    %c0_i32 = arith.constant 0 : i32
    %c0_i32_0 = arith.constant 0 : i32
    %c0_i32_1 = arith.constant 0 : i32
    return %c0_i32, %c0_i32_0 : i32, i32
  }
  func.func @transform_8(%arg0: i32) -> (i32, i32, i32) {
    %c0_i32 = arith.constant 0 : i32
    %c0_i32_0 = arith.constant 0 : i32
    %c0_i32_1 = arith.constant 0 : i32
    return %arg0, %c0_i32, %c0_i32_0 : i32, i32, i32
  }
}

</mosaic_0001>

<bundles_post_ra>
// kernel: tpu_custom_call.1
= control target key start
LH: loop header
LB: loop body
LE: loop exit
PB: predicated region body
PF: predicated region fallthrough
CT: control target
= control target key end

     0   :  { %13 = vsyncpa [#allocation3], 0  ;;  %s2055_s0 = inlined_call_operand.vmem [shape: s32[2,512], index: 0, kind: input, shape index: {}]   ;;  %s2056_s1 = inlined_call_operand.hbm [shape: f32[2,4,256], index: 1, kind: input, shape index: {}]   ;;  %s2057_s2 = inlined_call_operand.hbm [shape: s32[2,4,256], index: 2, kind: input, shape index: {}]   ;;  %s2058_s3 = inlined_call_operand.hbm [shape: f32[2,4,256], index: 3, kind: input, shape index: {}]   ;;  %s2059_s4 = inlined_call_operand.vmem [shape: f32[4,72], index: 4, kind: input, shape index: {}]   ;;  %s2060_s5 = inlined_call_operand.vmem [shape: f32[4,1], index: 5, kind: input, shape index: {}]   ;;  %s2061_s6 = inlined_call_operand.vmem [shape: f32[4,36], index: 6, kind: input, shape index: {}]   ;;  %s2062_s7 = inlined_call_operand.vmem [shape: f32[4,1], index: 7, kind: input, shape index: {}]   ;;  %s2063_s8 = inlined_call_operand.hbm [shape: f32[2,4,256], index: 8, kind: output, shape index: {}]  }
   0x1   :  { %14 = vsyncpa [#allocation6], 0 }
   0x2   :  { %15 = vsyncpa [#allocation4], 0  ;;  %s1143_s27 = smov [#allocation5]   ;;  %s1144_s29 = smov [#allocation2]  }
   0x3   :  { %s35_s28 = sshll.u32 %s1143_s27, 4  ;;  %s23_s30 = sshll.u32 %s1144_s29, 4  ;;  %s36_s28 = int_to_ptr.vmem [resolvable:$true] %s35_s28  ;;  %s24_s30 = int_to_ptr.vmem [resolvable:$true] %s23_s30 }
   0x4   :  { %s1065_s9 = scalar_lea.vmem %s36_s28, 256  ;;  %p1070_p1 = scmp.lt.s32.totalorder %s36_s28, %s36_s28 }
   0x5   :  { %p1066_p0 = scmp.ne.s32.totalorder %s36_s28, %s1065_s9  ;;  %p1071_p2 = scmp.lt.s32.totalorder %s1065_s9, %s1065_s9 }
   0x7   :  { %p1072_p3 = por %p1071_p2, %p1070_p1 }
   0x9   :  { %p1073_p4 = pnand %p1072_p3, %p1066_p0 }
   0xb   :  { %1076 = shalt.err (!%p1073_p4)
}
   0xc   :  { %s1145_s10 = smov 128   ;;  %s1146_s11 = smov 8  }
   0xd   :  { %41 = dma.hbm_to_vmem [thread:$0]  %s2057_s2, 256, %s36_s28, [#allocation6], %s1145_s10, %s1145_s10, %s1146_s11  }
   0xe   :  { %s1085_s14 = scalar_lea.vmem %s24_s30, 256  ;;  %p1090_p6 = scmp.lt.s32.totalorder %s24_s30, %s24_s30 }
   0xf   :  { %p1086_p5 = scmp.ne.s32.totalorder %s24_s30, %s1085_s14  ;;  %p1091_p7 = scmp.lt.s32.totalorder %s1085_s14, %s1085_s14 }
  0x11   :  { %p1092_p8 = por %p1091_p7, %p1090_p6 }
  0x13   :  { %p1093_p9 = pnand %p1092_p8, %p1086_p5 }
  0x15   :  { %1096 = shalt.err (!%p1093_p9)
}
  0x16   :  { %29 = dma.hbm_to_vmem [thread:$0]  %s2056_s1, 256, %s24_s30, [#allocation3], %s1145_s10, %s1145_s10, %s1146_s11  }
  0x17   :  { %s1147_s17 = smov [#allocation7]  }
  0x18   :  { %s47_s18 = sshll.u32 %s1147_s17, 4  ;;  %s48_s18 = int_to_ptr.vmem [resolvable:$true] %s47_s18 }
  0x19   :  { %s1105_s19 = scalar_lea.vmem %s48_s18, 256  ;;  %p1110_p11 = scmp.lt.s32.totalorder %s48_s18, %s48_s18 }
  0x1a   :  { %p1106_p10 = scmp.ne.s32.totalorder %s48_s18, %s1105_s19  ;;  %p1111_p12 = scmp.lt.s32.totalorder %s1105_s19, %s1105_s19 }
  0x1c   :  { %p1112_p13 = por %p1111_p12, %p1110_p11 }
  0x1e   :  { %p1113_p0 = pnand %p1112_p13, %p1106_p10 }
  0x20   :  { %1116 = shalt.err (!%p1113_p0)
}
  0x21   :  { %53 = dma.hbm_to_vmem [thread:$0]  %s2058_s3, 256, %s48_s18, [#allocation6], %s1145_s10, %s1145_s10, %s1146_s11  }
  0x22   :  { %1137 = dma.done.wait [#allocation3], 256  }
  0x23   :  { %1138 = vsyncadd [#allocation3], 4294967040 }
  0x24   :  { %1139 = dma.done.wait [#allocation6], 512  }
  0x25   :  { %1140 = vsyncadd [#allocation6], 4294966784  ;;  %v95_v0 = vlaneseq  ;;  %v1148_v1 = vmov 0   ;;  %vm2066_vm0 = vcmask 1043456   ;;  %v76_v7 = vld [vmem:[#allocation2 + $0x8] sm:$0xff]  ;;  %v85_v8 = vld [vmem:[#allocation5 + $0x8] sm:$0xff] }
  0x26   :  { %1050 = vset.pattern.permute.xlu0 %v1148_v1  ;;  %v1233_v6 = vld [vmem:[%s2055_s0] ss:$2 sm:$0xf]  ;;  %v90_v10 = vld [vmem:[#allocation7 + $0x8] sm:$0xff]  ;;  %v83_v13 = vld [vmem:[#allocation5] sm:$0xff]  ;;  %v81_v15 = vcombine.high %v76_v7, %v76_v7  ;;  %v87_v16 = vcombine.high %v85_v8, %v85_v8  ;;  %s1149_s23 = smov 111  }
  0x27   :  { %v96_v2 = vshrl.u32 %v95_v0, 7  ;;  %v74_v12 = vld [vmem:[#allocation2] sm:$0xff]  ;;  %v121_v17 = vrot.slane %v90_v10, 4  ;;  %v94_v19 = vcombine.high %v90_v10, %v90_v10  ;;  %v86_v23 = vcombine.high %v83_v13, %v83_v13  ;;  %s1151_s24 = smov 113   ;;  %s1152_s25 = smov 127  }
  0x28   :  { %v88_v18 = vld [vmem:[#allocation7] sm:$0xff]  ;;  %v78_v21 = vcombine.high %v74_v12, %v74_v12  ;;  %vm133_vm4 = vcmp.lt.s32.totalorder %v1233_v6, 240  ;;  %vm132_vm10 = vcmp.ge.s32.totalorder %v1233_v6, 16  ;;  %s1153_s26 = smov 1   ;;  %s1154_s27 = smov 15  }
  0x29   :  { %v1224_v3 = vsub.s32 2, %v96_v2  ;;  %v1226_v4 = vsub.s32 0, %v96_v2  ;;  %v1228_v5 = vsub.s32 3, %v96_v2  ;;  %v1235_v9 = vsub.s32 1, %v96_v2  ;;  %s1155_s28 = smov 16   ;;  %s1157_s29 = smov 17  }
  0x2a   :  { %v119_v22 = vrot.slane %v88_v18, 4  ;;  %v1246_v24 = vld [vmem:[%s2055_s0 + $0x1] ss:$2 sm:$0xf]  ;;  %v92_v27 = vcombine.high %v88_v18, %v88_v18  ;;  %v1273_v33 = vsel %vm133_vm4, 1, %v1148_v1  ;;  %s1150_s0 = smov 112  }
  0x2b   :  { %v106_v11 = vrot.slane %v1233_v6, %v1224_v3  ;;  %v98_v14 = vrot.slane %v1233_v6, %v1226_v4  ;;  %v110_v20 = vrot.slane %v1233_v6, %v1228_v5  ;;  %v102_v31 = vrot.slane %v1233_v6, %v1235_v9 }
  0x2c   :  { %vm134_vm5 = vcmp.ge.s32.totalorder %v1246_v24, 1  ;;  %vm135_vm6 = vcmp.lt.s32.totalorder %v1246_v24, 15  ;;  %v391_v36 = vrot.slane %v1273_v33, %v1235_v9  ;;  %v399_v37 = vrot.slane %v1273_v33, %v1228_v5 }
  0x2d   :  { %vm113_vm1 = vcmp.eq.s32.totalorder %v85_v8, %v106_v11  ;;  %vm111_vm2 = vcmp.eq.s32.totalorder %v83_v13, %v98_v14  ;;  %vm114_vm3 = vcmp.eq.s32.totalorder %v87_v16, %v110_v20  ;;  %vm112_vm7 = vcmp.eq.s32.totalorder %v86_v23, %v102_v31  ;;  %vm139_vm8 = vmand %vm133_vm4, %vm135_vm6 }
  0x2e   :  { %v117_v25 = vsel %vm113_vm1, %v76_v7, 0.0  ;;  %v115_v26 = vsel %vm111_vm2, %v74_v12, 0.0  ;;  %v118_v30 = vsel %vm114_vm3, %v81_v15, 0.0  ;;  %v116_v34 = vsel %vm112_vm7, %v78_v21, 0.0  ;;  %vm138_vm9 = vmand %vm133_vm4, %vm134_vm5 }
  0x2f   :  { %v1249_v28 = vsel %vm2066_vm0, %v117_v25, %v121_v17  ;;  %v1252_v29 = vsel %vm2066_vm0, %v115_v26, %v119_v22  ;;  %v1264_v32 = vsel %vm2066_vm0, %v118_v30, %v94_v19  ;;  %v1276_v35 = vsel %vm139_vm8, 1, %v1148_v1  ;;  %vm137_vm11 = vmand %vm132_vm10, %vm135_vm6  ;;  %v447_v17 = vld [vmem:[%s2060_s5] sm:$0xf] }
  0x30   :  { %412 = vrot.lane.b32.xlu1 %v1249_v28, %s1149_s23  ;;  %408 = vrot.lane.b32.xlu0 %v1252_v29, %s1149_s23  ;;  %v1283_v38 = vsel %vm2066_vm0, %v116_v34, %v92_v27  ;;  %v429_v39 = vrot.slane %v1276_v35, %v1235_v9  ;;  %v437_v40 = vrot.slane %v1276_v35, %v1228_v5  ;;  %v1306_v45 = vsel %vm138_vm9, 1, %v1148_v1  ;;  %vm136_vm12 = vmand %vm132_vm10, %vm134_vm5 }
  0x31   :  { %v425_v41 = vrot.slane %v1276_v35, %v1226_v4  ;;  %v433_v42 = vrot.slane %v1276_v35, %v1224_v3  ;;  %v387_v43 = vrot.slane %v1273_v33, %v1226_v4  ;;  %v395_v44 = vrot.slane %v1273_v33, %v1224_v3 }
  0x32   :  { %v353_v46 = vrot.slane %v1306_v45, %v1235_v9  ;;  %v361_v47 = vrot.slane %v1306_v45, %v1228_v5  ;;  %v349_v48 = vrot.slane %v1306_v45, %v1226_v4  ;;  %v357_v49 = vrot.slane %v1306_v45, %v1224_v3 }
  0x33   :  { %v1327_v50 = vsel %vm135_vm6, 1, %v1148_v1  ;;  %v1344_v55 = vsel %vm134_vm5, 1, %v1148_v1  ;;  %v1368_v60 = vsel %vm137_vm11, 1, %v1148_v1  ;;  %v1389_v7 = vsel %vm132_vm10, 1, %v1148_v1 }
  0x34   :  { %414 = vrot.lane.b32.xlu1 %v1264_v32, %s1149_s23  ;;  %410 = vrot.lane.b32.xlu0 %v1283_v38, %s1149_s23  ;;  %v315_v51 = vrot.slane %v1327_v50, %v1235_v9  ;;  %v323_v52 = vrot.slane %v1327_v50, %v1228_v5  ;;  %v311_v53 = vrot.slane %v1327_v50, %v1226_v4  ;;  %v1412_v13 = vsel %vm136_vm12, 1, %v1148_v1 }
  0x35   :  { %v319_v54 = vrot.slane %v1327_v50, %v1224_v3  ;;  %v277_v56 = vrot.slane %v1344_v55, %v1235_v9  ;;  %v273_v57 = vrot.slane %v1344_v55, %v1226_v4  ;;  %v285_v58 = vrot.slane %v1344_v55, %v1228_v5 }
  0x36   :  { %v281_v59 = vrot.slane %v1344_v55, %v1224_v3  ;;  %v239_v61 = vrot.slane %v1368_v60, %v1235_v9  ;;  %v235_v62 = vrot.slane %v1368_v60, %v1226_v4  ;;  %v247_v63 = vrot.slane %v1368_v60, %v1228_v5 }
  0x37   :  { %v243_v2 = vrot.slane %v1368_v60, %v1224_v3  ;;  %v201_v8 = vrot.slane %v1389_v7, %v1235_v9  ;;  %v197_v10 = vrot.slane %v1389_v7, %v1226_v4  ;;  %v209_v11 = vrot.slane %v1389_v7, %v1228_v5 }
  0x38   :  { %372 = vrot.lane.b32.xlu1 %v1283_v38, %s1150_s0  ;;  %370 = vrot.lane.b32.xlu0 %v1252_v29, %s1150_s0  ;;  %v205_v12 = vrot.slane %v1389_v7, %v1224_v3  ;;  %v163_v14 = vrot.slane %v1412_v13, %v1235_v9  ;;  %v159_v6 = vrot.slane %v1412_v13, %v1226_v4  ;;  %v1156_v1 = vmov 0.0  }
  0x39   :  { %v171_v15 = vrot.slane %v1412_v13, %v1228_v5  ;;  %v167_v16 = vrot.slane %v1412_v13, %v1224_v3  ;;  %521 = vmatprep.mubr.f32.mxu0 %v1156_v1  ;;  %592 = vmatprep.mubr.f32.mxu1 %v1156_v1  ;;  %v1448_v18 = vand.u32 127, %v95_v0  ;;  %vm1454_vm14 = vcmp.eq.s32.totalorder %v429_v39, 1 }
  0x3a   :  { %vm1461_vm15 = vcmp.eq.s32.totalorder %v437_v40, 1  ;;  %vm1468_vm1 = vcmp.eq.s32.totalorder %v425_v41, 1  ;;  %vm1475_vm2 = vcmp.eq.s32.totalorder %v433_v42, 1  ;;  %vm1499_vm4 = vcmp.eq.s32.totalorder %v391_v36, 1 }
  0x3b   :  { %vm2067_vm13 = vcmp.lt.s32.totalorder %v1448_v18, 111  ;;  %vm2064_vm3 = vcmp.lt.s32.totalorder %v1448_v18, 112  ;;  %vm1506_vm5 = vcmp.eq.s32.totalorder %v399_v37, 1  ;;  %v2103_v40 = vmov 0 }
  0x3c   :  { %376 = vrot.lane.b32.xlu1 %v1264_v32, %s1150_s0  ;;  %374 = vrot.lane.b32.xlu0 %v1249_v28, %s1150_s0  ;;  %v2104_v40 = vsel %vm1506_vm5, 4294967295, %v2103_v40  ;;  %vm1513_vm6 = vcmp.eq.s32.totalorder %v387_v43, 1  ;;  %vm1520_vm7 = vcmp.eq.s32.totalorder %v395_v44, 1  ;;  %vm2065_vm8 = vcmp.lt.s32.totalorder %v1448_v18, 113 }
  0x3d   :  { %vm1544_vm9 = vcmp.eq.s32.totalorder %v353_v46, 1  ;;  %vm1551_vm10 = vcmp.eq.s32.totalorder %v361_v47, 1  ;;  %vm1558_vm11 = vcmp.eq.s32.totalorder %v349_v48, 1  ;;  %vm1565_vm12 = vcmp.eq.s32.totalorder %v357_v49, 1 }
  0x3e   :  { %v2115_v46 = vmov 0  ;;  %vm1596_vm0 = vcmp.eq.s32.totalorder %v323_v52, 1  ;;  %v2129_v50 = vmov 0  ;;  %v2137_v55 = vmov 0 }
  0x3f   :  { %v2116_v46 = vsel %vm1565_vm12, 4294967295, %v2115_v46  ;;  %v2148_v60 = vmov 0  ;;  %v2159_v7 = vmov 0  ;;  %v2163_v9 = vmov 0 }
  0x40   :  { %334 = vrot.lane.b32.xlu1 %v1283_v38, %s1151_s24  ;;  %332 = vrot.lane.b32.xlu0 %v1252_v29, %s1151_s24 }
  0x44   :  { %338 = vrot.lane.b32.xlu1 %v1264_v32, %s1151_s24  ;;  %336 = vrot.lane.b32.xlu0 %v1249_v28, %s1151_s24 }
  0x48   :  { %296 = vrot.lane.b32.xlu1 %v1283_v38, %s1152_s25  ;;  %294 = vrot.lane.b32.xlu0 %v1252_v29, %s1152_s25 }
  0x4c   :  { %300 = vrot.lane.b32.xlu1 %v1264_v32, %s1152_s25  ;;  %298 = vrot.lane.b32.xlu0 %v1249_v28, %s1152_s25 }
  0x50   :  { %258 = vrot.lane.b32.xlu1 %v1283_v38, %s1153_s26  ;;  %256 = vrot.lane.b32.xlu0 %v1252_v29, %s1153_s26 }
  0x54   :  { %262 = vrot.lane.b32.xlu1 %v1264_v32, %s1153_s26  ;;  %260 = vrot.lane.b32.xlu0 %v1249_v28, %s1153_s26 }
  0x58   :  { %220 = vrot.lane.b32.xlu1 %v1283_v38, %s1154_s27  ;;  %218 = vrot.lane.b32.xlu0 %v1252_v29, %s1154_s27 }
  0x5c   :  { %224 = vrot.lane.b32.xlu1 %v1264_v32, %s1154_s27  ;;  %222 = vrot.lane.b32.xlu0 %v1249_v28, %s1154_s27 }
  0x60   :  { %182 = vrot.lane.b32.xlu1 %v1283_v38, %s1155_s28  ;;  %180 = vrot.lane.b32.xlu0 %v1252_v29, %s1155_s28 }
  0x64   :  { %186 = vrot.lane.b32.xlu1 %v1264_v32, %s1155_s28  ;;  %184 = vrot.lane.b32.xlu0 %v1249_v28, %s1155_s28 }
  0x68   :  { %142 = vrot.lane.b32.xlu1 %v1283_v38, %s1157_s29  ;;  %140 = vrot.lane.b32.xlu0 %v1252_v29, %s1157_s29 }
  0x6c   :  { %146 = vrot.lane.b32.xlu1 %v1264_v32, %s1157_s29  ;;  %144 = vrot.lane.b32.xlu0 %v1249_v28, %s1157_s29 }
  0x70   :  { %450 = vperm.xlu0 %1050, %v447_v17  }
  0xa2   :  { %v413_v19 = vpop.permute.xlu1 %412  ;;  %v409_v20 = vpop.permute.xlu0 %408 }
  0xa6   :  { %v415_v0 = vpop.permute.xlu1 %414  ;;  %v411_v23 = vpop.permute.xlu0 %410 }
  0xa7   :  { %v418_v26 = vsel %vm2067_vm13, %v411_v23, %v413_v19  ;;  %v420_v27 = vsel %vm2067_vm13, %v415_v0, %v409_v20  ;;  %v419_v30 = vsel %vm2067_vm13, %v409_v20, %v411_v23  ;;  %v417_v31 = vsel %vm2067_vm13, %v413_v19, %v415_v0 }
  0xa8   :  { %994 = vmatprep.subr.msk.mxu0 %vm1454_vm14, %v418_v26  ;;  %1011 = vmatprep.subr.msk.mxu1 %vm1461_vm15, %v420_v27  ;;  %v2109_v0 = vmov 0  ;;  %v2111_v23 = vmov 0  ;;  %vm1603_vm13 = vcmp.eq.s32.totalorder %v311_v53, 1 }
  0xa9   :  { %995 = vmatpush1.msk.msra.mxu0 %vm1468_vm1, %v419_v30  ;;  %1012 = vmatpush1.msk.msra.mxu1 %vm1475_vm2, %v417_v31  ;;  %v2110_v0 = vsel %vm1544_vm9, 4294967295, %v2109_v0  ;;  %v2112_v23 = vsel %vm1551_vm10, 4294967295, %v2111_v23  ;;  %v2113_v30 = vmov 0 }
  0xaa   :  { %v373_v34 = vpop.permute.xlu1 %372  ;;  %v371_v35 = vpop.permute.xlu0 %370  ;;  %v2114_v30 = vsel %vm1558_vm11, 4294967295, %v2113_v30 }
  0xab   :  { %v381_v43 = vsel %vm2064_vm3, %v371_v35, %v373_v34 }
  0xae   :  { %v377_v41 = vpop.permute.xlu1 %376  ;;  %v375_v42 = vpop.permute.xlu0 %374 }
  0xaf   :  { %v382_v37 = vsel %vm2064_vm3, %v377_v41, %v371_v35  ;;  %v379_v19 = vsel %vm2064_vm3, %v375_v42, %v377_v41  ;;  %v380_v20 = vsel %vm2064_vm3, %v373_v34, %v375_v42  ;;  %v2119_v41 = vmov 0 }
  0xb0   :  { %996 = vmatprep.subr.msk.mxu0 %vm1499_vm4, %v380_v20  ;;  %1013 = vmatprep.subr.msk.mxu1 %vm1506_vm5, %v382_v37  ;;  %v2120_v41 = vsel %vm1596_vm0, 4294967295, %v2119_v41  ;;  %vm1610_vm3 = vcmp.eq.s32.totalorder %v319_v54, 1  ;;  %vm2075_vm5 = vcmp.lt.s32.totalorder %v1448_v18, 1 }
  0xb1   :  { %997 = vmatpush1.msk.msra.mxu0 %vm1513_vm6, %v381_v43  ;;  %1014 = vmatpush1.msk.msra.mxu1 %vm1520_vm7, %v379_v19 }
  0xb2   :  { %v335_v33 = vpop.permute.xlu1 %334  ;;  %v333_v44 = vpop.permute.xlu0 %332 }
  0xb3   :  { %v343_v48 = vsel %vm2065_vm8, %v333_v44, %v335_v33 }
  0xb6   :  { %v339_v26 = vpop.permute.xlu1 %338  ;;  %v337_v27 = vpop.permute.xlu0 %336 }
  0xb7   :  { %v344_v47 = vsel %vm2065_vm8, %v339_v26, %v333_v44  ;;  %v341_v31 = vsel %vm2065_vm8, %v337_v27, %v339_v26  ;;  %v342_v34 = vsel %vm2065_vm8, %v335_v33, %v337_v27  ;;  %vm1589_vm8 = vcmp.eq.s32.totalorder %v315_v51, 1 }
  0xb8   :  { %998 = vmatprep.subr.msk.mxu0 %vm1544_vm9, %v342_v34  ;;  %1015 = vmatprep.subr.msk.mxu1 %vm1551_vm10, %v344_v47  ;;  %v2123_v51 = vmov 0  ;;  %vm2125_vm10 = vcmp.lt.s32.totalorder %v1448_v18, 127 }
  0xb9   :  { %999 = vmatpush1.msk.msra.mxu0 %vm1558_vm11, %v343_v48  ;;  %1016 = vmatpush1.msk.msra.mxu1 %vm1565_vm12, %v341_v31  ;;  %v2124_v51 = vsel %vm1610_vm3, 4294967295, %v2123_v51  ;;  %vm2126_vm12 = vmmov %vm2125_vm10  ;;  %v2139_v31 = vmov 0 }
  0xba   :  { %v297_v45 = vpop.permute.xlu1 %296  ;;  %v295_v49 = vpop.permute.xlu0 %294  ;;  %vm2127_vm9 = vmmov %vm2125_vm10 }
  0xbb   :  { %vm2128_vm11 = vmmov %vm2127_vm9 }
  0xbc   :  { %v305_v53 = vsel %vm2128_vm11, %v295_v49, %v297_v45  ;;  %vm1656_vm11 = vcmp.eq.s32.totalorder %v285_v58, 1 }
  0xbe   :  { %v301_v42 = vpop.permute.xlu1 %300  ;;  %v299_v37 = vpop.permute.xlu0 %298 }
  0xbf   :  { %v306_v52 = vsel %vm2125_vm10, %v301_v42, %v295_v49  ;;  %v303_v20 = vsel %vm2126_vm12, %v299_v37, %v301_v42  ;;  %v304_v43 = vsel %vm2127_vm9, %v297_v45, %v299_v37  ;;  %vm1634_vm9 = vcmp.eq.s32.totalorder %v277_v56, 1 }
  0xc0   :  { %1000 = vmatprep.subr.msk.mxu0 %vm1589_vm8, %v304_v43  ;;  %1017 = vmatprep.subr.msk.mxu1 %vm1596_vm0, %v306_v52  ;;  %v2130_v50 = vsel %vm1634_vm9, 4294967295, %v2129_v50  ;;  %vm1649_vm10 = vcmp.eq.s32.totalorder %v273_v57, 1  ;;  %v2131_v56 = vmov 0  ;;  %vm1663_vm12 = vcmp.eq.s32.totalorder %v281_v59, 1 }
  0xc1   :  { %1001 = vmatpush1.msk.msra.mxu0 %vm1603_vm13, %v305_v53  ;;  %1018 = vmatpush1.msk.msra.mxu1 %vm1610_vm3, %v303_v20  ;;  %v2132_v56 = vsel %vm1649_vm10, 4294967295, %v2131_v56  ;;  %vm1683_vm3 = vcmp.eq.s32.totalorder %v239_v61, 1  ;;  %v2141_v61 = vmov 0  ;;  %v2143_v45 = vmov 0 }
  0xc2   :  { %v259_v54 = vpop.permute.xlu1 %258  ;;  %479 = vmatprep.subr.mxu0 %v1283_v38  ;;  %v257_v33 = vpop.permute.xlu0 %256  ;;  %550 = vmatprep.subr.mxu1 %v1264_v32  ;;  %v2133_v32 = vmov 0  ;;  %v2138_v55 = vsel %vm1683_vm3, 4294967295, %v2137_v55  ;;  %vm2082_vm0 = vcmp.lt.s32.totalorder %v1448_v18, 16  ;;  %v2150_v52 = vmov 0 }
  0xc3   :  { %v267_v44 = vsel %vm2075_vm5, %v257_v33, %v259_v54  ;;  %480 = vmatpush1.msra.mxu0 %v1252_v29  ;;  %551 = vmatpush1.msra.mxu1 %v1249_v28  ;;  %v2134_v32 = vsel %vm1656_vm11, 4294967295, %v2133_v32  ;;  %v2135_v28 = vmov 0  ;;  %v2154_v53 = vmov 0 }
  0xc4   :  { %1002 = vmatprep.subr.msk.mxu0 %vm1634_vm9, %v267_v44  ;;  %v2136_v28 = vsel %vm1663_vm12, 4294967295, %v2135_v28  ;;  %vm2077_vm9 = vcmp.lt.s32.totalorder %v1448_v18, 15 }
  0xc6   :  { %v263_v29 = vpop.permute.xlu1 %262  ;;  %v261_v38 = vpop.permute.xlu0 %260 }
  0xc7   :  { %v268_v57 = vsel %vm2075_vm5, %v263_v29, %v257_v33  ;;  %v265_v26 = vsel %vm2075_vm5, %v261_v38, %v263_v29  ;;  %v266_v58 = vsel %vm2075_vm5, %v259_v54, %v261_v38  ;;  %vm1694_vm5 = vcmp.eq.s32.totalorder %v235_v62, 1 }
  0xc8   :  { %1003 = vmatpush1.msk.msra.mxu0 %vm1649_vm10, %v268_v57  ;;  %1019 = vmatprep.subr.msk.mxu1 %vm1656_vm11, %v265_v26  ;;  %v2140_v31 = vsel %vm1694_vm5, 4294967295, %v2139_v31  ;;  %vm1701_vm11 = vcmp.eq.s32.totalorder %v247_v63, 1  ;;  %v446_v57 = vld [vmem:[%s2059_s4] sm:$0xf] }
  0xc9   :  { %1020 = vmatpush1.msk.msra.mxu1 %vm1663_vm12, %v266_v58  ;;  %v2142_v61 = vsel %vm1701_vm11, 4294967295, %v2141_v61 }
  0xca   :  { %v221_v59 = vpop.permute.xlu1 %220  ;;  %v219_v27 = vpop.permute.xlu0 %218 }
  0xcb   :  { %v229_v47 = vsel %vm2077_vm9, %v219_v27, %v221_v59  ;;  %vm1708_vm9 = vcmp.eq.s32.totalorder %v243_v2, 1 }
  0xcc   :  { %1004 = vmatprep.subr.msk.mxu0 %vm1683_vm3, %v229_v47  ;;  %v2144_v45 = vsel %vm1708_vm9, 4294967295, %v2143_v45  ;;  %vm2145_vm3 = vcmp.lt.s32.totalorder %v1448_v18, 15 }
  0xcd   :  { %vm2146_vm10 = vmmov %vm2145_vm3 }
  0xce   :  { %v225_v34 = vpop.permute.xlu1 %224  ;;  %v223_v48 = vpop.permute.xlu0 %222  ;;  %vm2147_vm12 = vmmov %vm2145_vm3 }
  0xcf   :  { %v230_v62 = vsel %vm2145_vm3, %v225_v34, %v219_v27  ;;  %v227_v49 = vsel %vm2146_vm10, %v223_v48, %v225_v34  ;;  %v228_v63 = vsel %vm2147_vm12, %v221_v59, %v223_v48  ;;  %vm1728_vm3 = vcmp.eq.s32.totalorder %v201_v8, 1 }
  0xd0   :  { %1005 = vmatpush1.msk.msra.mxu0 %vm1694_vm5, %v230_v62  ;;  %1021 = vmatprep.subr.msk.mxu1 %vm1701_vm11, %v227_v49  ;;  %v2149_v60 = vsel %vm1728_vm3, 4294967295, %v2148_v60  ;;  %vm1739_vm10 = vcmp.eq.s32.totalorder %v197_v10, 1  ;;  %vm1746_vm12 = vcmp.eq.s32.totalorder %v209_v11, 1  ;;  %v2152_v8 = vmov 0 }
  0xd1   :  { %1022 = vmatpush1.msk.msra.mxu1 %vm1708_vm9, %v228_v63  ;;  %v2151_v52 = vsel %vm1739_vm10, 4294967295, %v2150_v52  ;;  %v2153_v8 = vsel %vm1746_vm12, 4294967295, %v2152_v8  ;;  %vm2156_vm11 = vcmp.lt.s32.totalorder %v1448_v18, 16  ;;  %vm2087_vm9 = vcmp.lt.s32.totalorder %v1448_v18, 17  ;;  %v796_v63 = vld [vmem:[%s2062_s7] sm:$0xf] }
  0xd2   :  { %v183_v2 = vpop.permute.xlu1 %182  ;;  %v181_v42 = vpop.permute.xlu0 %180  ;;  %vm2157_vm5 = vmmov %vm2156_vm11 }
  0xd3   :  { %v191_v37 = vsel %vm2082_vm0, %v181_v42, %v183_v2  ;;  %vm1753_vm0 = vcmp.eq.s32.totalorder %v205_v12, 1 }
  0xd4   :  { %1006 = vmatprep.subr.msk.mxu0 %vm1728_vm3, %v191_v37  ;;  %v2155_v53 = vsel %vm1753_vm0, 4294967295, %v2154_v53  ;;  %vm2158_vm3 = vmmov %vm2157_vm5 }
  0xd6   :  { %v187_v20 = vpop.permute.xlu1 %186  ;;  %v185_v43 = vpop.permute.xlu0 %184 }
  0xd7   :  { %v192_v10 = vsel %vm2156_vm11, %v187_v20, %v181_v42  ;;  %v189_v54 = vsel %vm2157_vm5, %v185_v43, %v187_v20  ;;  %v190_v11 = vsel %vm2158_vm3, %v183_v2, %v185_v43  ;;  %vm1773_vm11 = vcmp.eq.s32.totalorder %v163_v14, 1 }
  0xd8   :  { %1007 = vmatpush1.msk.msra.mxu0 %vm1739_vm10, %v192_v10  ;;  %1023 = vmatprep.subr.msk.mxu1 %vm1746_vm12, %v189_v54  ;;  %v2160_v7 = vsel %vm1773_vm11, 4294967295, %v2159_v7  ;;  %vm1784_vm5 = vcmp.eq.s32.totalorder %v159_v6, 1  ;;  %vm1791_vm3 = vcmp.eq.s32.totalorder %v171_v15, 1 }
  0xd9   :  { %1024 = vmatpush1.msk.msra.mxu1 %vm1753_vm0, %v190_v11  ;;  %v2164_v9 = vsel %vm1791_vm3, 4294967295, %v2163_v9  ;;  %vm1801_vm0 = vcmp.eq.s32.totalorder %v167_v16, 1 }
  0xda   :  { %v143_v12 = vpop.permute.xlu1 %142  ;;  %v141_v33 = vpop.permute.xlu0 %140 }
  0xdb   :  { %v153_v44 = vsel %vm2087_vm9, %v141_v33, %v143_v12  ;;  %vm453_vm9 = vcmask 588800  }
  0xdc   :  { %1008 = vmatprep.subr.msk.mxu0 %vm1773_vm11, %v153_v44  ;;  %vm2167_vm11 = vcmp.lt.s32.totalorder %v1448_v18, 17 }
  0xdd   :  { %vm2168_vm12 = vmmov %vm2167_vm11 }
  0xde   :  { %v147_v14 = vpop.permute.xlu1 %146  ;;  %v145_v38 = vpop.permute.xlu0 %144  ;;  %vm2169_vm10 = vmmov %vm2167_vm11 }
  0xdf   :  { %v154_v5 = vsel %vm2167_vm11, %v147_v14, %v141_v33  ;;  %v151_v6 = vsel %vm2168_vm12, %v145_v38, %v147_v14  ;;  %v152_v15 = vsel %vm2169_vm10, %v143_v12, %v145_v38  ;;  %vm2172_vm12 = vcmask 1043456  }
  0xe0   :  { %1009 = vmatpush1.msk.msra.mxu0 %vm1784_vm5, %v154_v5  ;;  %1025 = vmatprep.subr.msk.mxu1 %vm1791_vm3, %v151_v6  ;;  %vm2173_vm11 = vmmov %vm2172_vm12 }
  0xe1   :  { %1010 = vmatmul.mubr.msk.f32.vlgmr.msra.gmra.mxu0 %vm453_vm9, %v446_v57  ;;  %1026 = vmatpush1.msk.msra.mxu1 %vm1801_vm0, %v152_v15 }
  0xe2   :  { %1027 = vmatmul.mubr.msk.f32.vlgmr.msra.gmra.mxu1 %vm453_vm9, %v446_v57  ;;  %882 = vmatprep.mubr.f32.mxu0 %v1156_v1  ;;  %vm2170_vm9 = vcmp.lt.s32.totalorder %v1448_v18, 111 }
  0xe3   :  { %953 = vmatprep.mubr.f32.mxu1 %v1156_v1  ;;  %vm2171_vm10 = vmmov %vm2170_vm9 }
  0xe4   :  { %vm2174_vm3 = vmmov %vm2170_vm9 }
  0xeb   :  { %v451_v3 = vpop.permute.xlu0 %450 }
 0x1a1   :  { %v523_v13 = vpop.f32.mrf.mxu0 }
 0x1a2   :  { %v524_v16 = vadd.f32 %v523_v13, %v451_v3  ;;  %v594_v26 = vpop.f32.mrf.mxu1 }
 0x1a3   :  { %v595_v58 = vadd.f32 %v594_v26, %v451_v3  ;;  %v525_v59 = vpop.f32.mrf.mxu0 }
 0x1a4   :  { %v1819_v27 = vmax.f32 %v524_v16, 0.0  ;;  %v526_v47 = vadd.f32 %v525_v59, %v451_v3  ;;  %v596_v48 = vpop.f32.mrf.mxu1 }
 0x1a5   :  { %v1821_v34 = vmax.f32 %v595_v58, 0.0  ;;  %v597_v1 = vadd.f32 %v596_v48, %v451_v3 }
 0x1a6   :  { %699 = vrot.lane.b32.xlu1 %v1819_v27, %s1150_s0  ;;  %v1827_v62 = vmax.f32 %v526_v47, 0.0 }
 0x1a7   :  { %703 = vrot.lane.b32.xlu0 %v1821_v34, %s1150_s0  ;;  %v1833_v49 = vmax.f32 %v597_v1, 0.0 }
 0x1aa   :  { %701 = vrot.lane.b32.xlu1 %v1827_v62, %s1150_s0 }
 0x1ab   :  { %715 = vrot.lane.b32.xlu0 %v1819_v27, %s1149_s23 }
 0x1ae   :  { %705 = vrot.lane.b32.xlu1 %v1833_v49, %s1150_s0 }
 0x1af   :  { %719 = vrot.lane.b32.xlu0 %v1821_v34, %s1149_s23 }
 0x1b2   :  { %717 = vrot.lane.b32.xlu1 %v1827_v62, %s1149_s23 }
 0x1b3   :  { %667 = vrot.lane.b32.xlu0 %v1819_v27, %s1152_s25 }
 0x1b6   :  { %721 = vrot.lane.b32.xlu1 %v1833_v49, %s1149_s23 }
 0x1b7   :  { %671 = vrot.lane.b32.xlu0 %v1821_v34, %s1152_s25 }
 0x1ba   :  { %669 = vrot.lane.b32.xlu1 %v1827_v62, %s1152_s25 }
 0x1bb   :  { %683 = vrot.lane.b32.xlu0 %v1819_v27, %s1151_s24 }
 0x1be   :  { %673 = vrot.lane.b32.xlu1 %v1833_v49, %s1152_s25 }
 0x1bf   :  { %687 = vrot.lane.b32.xlu0 %v1821_v34, %s1151_s24 }
 0x1c2   :  { %685 = vrot.lane.b32.xlu1 %v1827_v62, %s1151_s24 }
 0x1c3   :  { %651 = vrot.lane.b32.xlu0 %v1819_v27, %s1153_s26 }
 0x1c6   :  { %689 = vrot.lane.b32.xlu1 %v1833_v49, %s1151_s24 }
 0x1c7   :  { %655 = vrot.lane.b32.xlu0 %v1821_v34, %s1153_s26 }
 0x1ca   :  { %653 = vrot.lane.b32.xlu1 %v1827_v62, %s1153_s26 }
 0x1cb   :  { %619 = vrot.lane.b32.xlu0 %v1819_v27, %s1155_s28 }
 0x1ce   :  { %657 = vrot.lane.b32.xlu1 %v1833_v49, %s1153_s26 }
 0x1cf   :  { %623 = vrot.lane.b32.xlu0 %v1821_v34, %s1155_s28 }
 0x1d2   :  { %621 = vrot.lane.b32.xlu1 %v1827_v62, %s1155_s28 }
 0x1d3   :  { %635 = vrot.lane.b32.xlu0 %v1819_v27, %s1154_s27 }
 0x1d6   :  { %625 = vrot.lane.b32.xlu1 %v1833_v49, %s1155_s28 }
 0x1d7   :  { %639 = vrot.lane.b32.xlu0 %v1821_v34, %s1154_s27 }
 0x1da   :  { %637 = vrot.lane.b32.xlu1 %v1827_v62, %s1154_s27 }
 0x1db   :  { %603 = vrot.lane.b32.xlu0 %v1819_v27, %s1157_s29 }
 0x1de   :  { %641 = vrot.lane.b32.xlu1 %v1833_v49, %s1154_s27 }
 0x1df   :  { %607 = vrot.lane.b32.xlu0 %v1821_v34, %s1157_s29 }
 0x1e2   :  { %605 = vrot.lane.b32.xlu1 %v1827_v62, %s1157_s29 }
 0x1e3   :  { %799 = vperm.xlu0 %1050, %v796_v63  }
 0x1e6   :  { %609 = vrot.lane.b32.xlu1 %v1833_v49, %s1157_s29 }
 0x218   :  { %v700_v2 = vpop.permute.xlu1 %699 }
 0x219   :  { %v704_v42 = vpop.permute.xlu0 %703 }
 0x21c   :  { %v702_v37 = vpop.permute.xlu1 %701 }
 0x21d   :  { %v716_v20 = vpop.permute.xlu0 %715 }
 0x220   :  { %v706_v43 = vpop.permute.xlu1 %705 }
 0x221   :  { %v720_v10 = vpop.permute.xlu0 %719 }
 0x224   :  { %v718_v54 = vpop.permute.xlu1 %717 }
 0x225   :  { %v724_v11 = vsel %vm2170_vm9, %v718_v54, %v720_v10  ;;  %v725_v12 = vsel %vm2171_vm10, %v716_v20, %v718_v54  ;;  %v668_v33 = vpop.permute.xlu0 %667  ;;  %vm2175_vm9 = vmmov %vm2174_vm3  ;;  %vm2178_vm10 = vcmp.lt.s32.totalorder %v1448_v18, 112 }
 0x226   :  { %v727_v44 = vsel %vm1468_vm1, %v725_v12, 0.0  ;;  %v728_v14 = vsel %vm1454_vm14, %v724_v11, 0.0  ;;  %vm2176_vm1 = vmmov %vm2173_vm11  ;;  %v708_v13 = vsel %vm2178_vm10, %v702_v37, %v704_v42 }
 0x227   :  { %1028 = vmatprep.subr.msk.mxu0 %vm2172_vm12, %v728_v14  ;;  %vm2177_vm14 = vmmov %vm2176_vm1  ;;  %vm2180_vm12 = vcmp.lt.s32.totalorder %v1448_v18, 127  ;;  %v712_v59 = vsel %vm1499_vm4, %v708_v13, 0.0 }
 0x228   :  { %1029 = vmatpush1.msk.msra.mxu0 %vm2173_vm11, %v727_v44  ;;  %v722_v38 = vpop.permute.xlu1 %721 }
 0x229   :  { %v723_v57 = vsel %vm2174_vm3, %v720_v10, %v722_v38  ;;  %v726_v5 = vsel %vm2175_vm9, %v722_v38, %v716_v20  ;;  %v672_v6 = vpop.permute.xlu0 %671  ;;  %vm2179_vm3 = vmmov %vm2178_vm10  ;;  %v772_v10 = vrot.slane %v712_v59, 4  ;;  %vm2192_vm10 = vnez %v2124_v51 }
 0x22a   :  { %v729_v15 = vsel %vm1475_vm2, %v723_v57, 0.0  ;;  %v730_v24 = vsel %vm1461_vm15, %v726_v5, 0.0  ;;  %v709_v16 = vsel %vm2179_vm3, %v700_v2, %v702_v37  ;;  %vm2181_vm2 = vmmov %vm2180_vm12 }
 0x22b   :  { %1031 = vmatprep.subr.msk.mxu1 %vm2176_vm1, %v730_v24  ;;  %v711_v58 = vsel %vm1513_vm6, %v709_v16, 0.0  ;;  %vm2182_vm15 = vmmov %vm2179_vm3  ;;  %vm2186_vm6 = vnez %v2104_v40  ;;  %vm2189_vm1 = vnez %v2120_v41 }
 0x22c   :  { %1032 = vmatpush1.msk.msra.mxu1 %vm2177_vm14, %v729_v15  ;;  %v670_v21 = vpop.permute.xlu1 %669  ;;  %v707_v47 = vsel %vm2182_vm15, %v704_v42, %v706_v43  ;;  %vm2183_vm11 = vmmov %vm2179_vm3  ;;  %v771_v20 = vrot.slane %v711_v58, 4  ;;  %vm2191_vm14 = vnez %v2110_v0  ;;  %vm2193_vm3 = vcmask 1043456  }
 0x22d   :  { %v684_v3 = vpop.permute.xlu0 %683  ;;  %v676_v26 = vsel %vm2180_vm12, %v670_v21, %v672_v6  ;;  %v677_v25 = vsel %vm2181_vm2, %v668_v33, %v670_v21  ;;  %v710_v1 = vsel %vm2183_vm11, %v706_v43, %v700_v2  ;;  %vm2184_vm9 = vmmov %vm2181_vm2  ;;  %v713_v39 = vsel %vm1520_vm7, %v707_v47, 0.0 }
 0x22e   :  { %v680_v63 = vsel %vm1589_vm8, %v676_v26, 0.0  ;;  %v679_v37 = vsel %vm1603_vm13, %v677_v25, 0.0  ;;  %vm2185_vm4 = vmmov %vm2181_vm2  ;;  %v714_v2 = vsel %vm2186_vm6, %v710_v1, 0.0  ;;  %vm2187_vm8 = vcmp.lt.s32.totalorder %v1448_v18, 113 }
 0x22f   :  { %v760_v35 = vrot.slane %v680_v63, 4  ;;  %vm2188_vm13 = vmmov %vm2187_vm8  ;;  %v759_v12 = vrot.slane %v679_v37, 4  ;;  %vm2190_vm7 = vnez %v2114_v30  ;;  %v773_v57 = vrot.slane %v713_v39, 4 }
 0x230   :  { %v674_v22 = vpop.permute.xlu1 %673  ;;  %vm2194_vm12 = vmmov %vm2193_vm3  ;;  %v774_v5 = vrot.slane %v714_v2, 4 }
 0x231   :  { %v688_v48 = vpop.permute.xlu0 %687  ;;  %v678_v17 = vsel %vm2184_vm9, %v674_v22, %v668_v33  ;;  %v675_v42 = vsel %vm2185_vm4, %v672_v6, %v674_v22  ;;  %vm2195_vm2 = vmmov %vm2187_vm8  ;;  %vm2198_vm9 = vnez %v2116_v46  ;;  %vm2199_vm4 = vnez %v2112_v23 }
 0x232   :  { %v682_v36 = vsel %vm2189_vm1, %v678_v17, 0.0  ;;  %v681_v40 = vsel %vm2192_vm10, %v675_v42, 0.0  ;;  %vm2196_vm15 = vmmov %vm2195_vm2 }
 0x233   :  { %v762_v15 = vrot.slane %v682_v36, 4  ;;  %vm2197_vm11 = vmmov %vm2193_vm3  ;;  %v761_v24 = vrot.slane %v681_v40, 4 }
 0x234   :  { %v686_v54 = vpop.permute.xlu1 %685  ;;  %v788_v51 = vsel %vm2197_vm11, %v1827_v62, %v760_v35  ;;  %vm2200_vm6 = vmmov %vm2193_vm3  ;;  %vm2211_vm11 = vnez %v2132_v56 }
 0x235   :  { %v692_v19 = vsel %vm2187_vm8, %v686_v54, %v688_v48  ;;  %v693_v43 = vsel %vm2188_vm13, %v684_v3, %v686_v54  ;;  %v652_v11 = vpop.permute.xlu0 %651  ;;  %v787_v16 = vsel %vm2200_vm6, %v1819_v27, %v759_v12  ;;  %vm2201_vm8 = vmmov %vm2193_vm3 }
 0x236   :  { %v695_v33 = vsel %vm2190_vm7, %v693_v43, 0.0  ;;  %v696_v44 = vsel %vm2191_vm14, %v692_v19, 0.0  ;;  %vm2202_vm13 = vmmov %vm2193_vm3  ;;  %vm2205_vm14 = vcmp.lt.s32.totalorder %v1448_v18, 1 }
 0x237   :  { %v792_v14 = vsel %vm2193_vm3, %v696_v44, %v772_v10  ;;  %v791_v38 = vsel %vm2194_vm12, %v695_v33, %v771_v20  ;;  %vm2203_vm1 = vmmov %vm2193_vm3  ;;  %vm2207_vm3 = vnez %v2130_v50 }
 0x238   :  { %842 = vmatprep.subr.mxu0 %v792_v14  ;;  %v690_v6 = vpop.permute.xlu1 %689  ;;  %v790_v46 = vsel %vm2203_vm1, %v1833_v49, %v762_v15  ;;  %vm2204_vm7 = vmmov %vm2203_vm1 }
 0x239   :  { %v691_v41 = vsel %vm2195_vm2, %v688_v48, %v690_v6  ;;  %v694_v30 = vsel %vm2196_vm15, %v690_v6, %v684_v3  ;;  %v656_v0 = vpop.permute.xlu0 %655  ;;  %843 = vmatpush1.msra.mxu0 %v791_v38  ;;  %v789_v23 = vsel %vm2204_vm7, %v1821_v34, %v761_v24  ;;  %vm2206_vm10 = vmmov %vm2205_vm14  ;;  %vm2210_vm15 = vnez %v2136_v28 }
 0x23a   :  { %v697_v21 = vsel %vm2198_vm9, %v691_v41, 0.0  ;;  %v698_v13 = vsel %vm2199_vm4, %v694_v30, 0.0  ;;  %844 = vmatprep.subr.mxu0 %v788_v51  ;;  %vm2208_vm12 = vmmov %vm2206_vm10  ;;  %vm2212_vm9 = vcmp.lt.s32.totalorder %v1448_v18, 15  ;;  %vm2213_vm4 = vnez %v2134_v32 }
 0x23b   :  { %845 = vmatpush1.msra.mxu0 %v787_v16  ;;  %v794_v26 = vsel %vm2201_vm8, %v698_v13, %v774_v5  ;;  %v793_v3 = vsel %vm2202_vm13, %v697_v21, %v773_v57  ;;  %vm2209_vm2 = vmmov %vm2206_vm10  ;;  %vm2215_vm8 = vnez %v2138_v55  ;;  %vm2216_vm13 = vcmp.lt.s32.totalorder %v1448_v18, 16 }
 0x23c   :  { %913 = vmatprep.subr.mxu1 %v794_v26  ;;  %v654_v25 = vpop.permute.xlu1 %653  ;;  %vm2214_vm6 = vmmov %vm2212_vm9  ;;  %vm2217_vm7 = vnez %v2144_v45 }
 0x23d   :  { %v620_v22 = vpop.permute.xlu0 %619  ;;  %914 = vmatpush1.msra.mxu1 %v793_v3  ;;  %v661_v47 = vsel %vm2205_vm14, %v652_v11, %v654_v25  ;;  %v660_v63 = vsel %vm2206_vm10, %v654_v25, %v656_v0  ;;  %vm2218_vm14 = vmmov %vm2214_vm6 }
 0x23e   :  { %915 = vmatprep.subr.mxu1 %v790_v46  ;;  %v664_v49 = vsel %vm2207_vm3, %v661_v47, 0.0  ;;  %v665_v20 = vsel %vm2210_vm15, %v660_v63, 0.0  ;;  %vm2219_vm10 = vmmov %vm2214_vm6  ;;  %vm2220_vm3 = vnez %v2149_v60  ;;  %vm2223_vm15 = vnez %v2142_v61 }
 0x23f   :  { %916 = vmatpush1.msra.mxu1 %v789_v23  ;;  %v748_v10 = vrot.slane %v664_v49, 4  ;;  %v749_v56 = vrot.slane %v665_v20, 4 }
 0x240   :  { %v658_v62 = vpop.permute.xlu1 %657 }
 0x241   :  { %v624_v58 = vpop.permute.xlu0 %623  ;;  %v662_v37 = vsel %vm2208_vm12, %v658_v62, %v652_v11  ;;  %v659_v34 = vsel %vm2209_vm2, %v656_v0, %v658_v62  ;;  %vm2221_vm12 = vmmov %vm2216_vm13  ;;  %vm2222_vm2 = vnez %v2140_v31 }
 0x242   :  { %v663_v39 = vsel %vm2211_vm11, %v662_v37, 0.0  ;;  %v666_v50 = vsel %vm2213_vm4, %v659_v34, 0.0  ;;  %vm2224_vm11 = vmmov %vm2221_vm12 }
 0x243   :  { %v747_v43 = vrot.slane %v663_v39, 4  ;;  %v750_v12 = vrot.slane %v666_v50, 4  ;;  %vm2226_vm4 = vmmov %vm2203_vm1 }
 0x244   :  { %v622_v27 = vpop.permute.xlu1 %621 }
 0x245   :  { %v636_v59 = vpop.permute.xlu0 %635  ;;  %v629_v28 = vsel %vm2216_vm13, %v620_v22, %v622_v27  ;;  %vm2229_vm13 = vnez %v2151_v52 }
 0x246   :  { %v632_v33 = vsel %vm2220_vm3, %v629_v28, 0.0  ;;  %vm2234_vm3 = vnez %v2155_v53 }
 0x247   :  { %v736_v31 = vrot.slane %v632_v33, 4 }
 0x248   :  { %v626_v48 = vpop.permute.xlu1 %625 }
 0x249   :  { %v640_v1 = vpop.permute.xlu0 %639  ;;  %v630_v44 = vsel %vm2221_vm12, %v626_v48, %v620_v22  ;;  %v627_v45 = vsel %vm2224_vm11, %v624_v58, %v626_v48  ;;  %vm2235_vm12 = vmmov %vm2226_vm4  ;;  %v795_v22 = vld [vmem:[%s2061_s6] sm:$0xf]  ;;  %s1158_s6 = smov [#allocation8]  }
 0x24a   :  { %v631_v61 = vsel %vm2229_vm13, %v630_v44, 0.0  ;;  %s980_s15 = sshll.u32 %s1158_s6, 4  ;;  %s981_s15 = int_to_ptr.vmem [resolvable:$true] %s980_s15 }
 0x24b   :  { %v735_v21 = vrot.slane %v631_v61, 4  ;;  %s1117_s16 = scalar_lea.vmem %s981_s15, 256  ;;  %p1122_p2 = scmp.lt.s32.totalorder %s981_s15, %s981_s15 }
 0x24c   :  { %v638_v17 = vpop.permute.xlu1 %637  ;;  %p1118_p1 = scmp.ne.s32.totalorder %s981_s15, %s1117_s16  ;;  %p1123_p3 = scmp.lt.s32.totalorder %s1117_s16, %s1117_s16 }
 0x24d   :  { %v645_v42 = vsel %vm2212_vm9, %v636_v59, %v638_v17  ;;  %v644_v54 = vsel %vm2214_vm6, %v638_v17, %v640_v1  ;;  %v604_v35 = vpop.permute.xlu0 %603  ;;  %vm2225_vm9 = vmmov %vm2203_vm1 }
 0x24e   :  { %v648_v2 = vsel %vm2215_vm8, %v645_v42, 0.0  ;;  %v649_v32 = vsel %vm2217_vm7, %v644_v54, 0.0  ;;  %vm2227_vm6 = vmmov %vm2224_vm11  ;;  %vm2231_vm7 = vnez %v2153_v8  ;;  %vm2238_vm11 = vnez %v2164_v9  ;;  %p1124_p4 = por %p1123_p3, %p1122_p2 }
 0x24f   :  { %v784_v19 = vsel %vm2203_vm1, %v648_v2, %v748_v10  ;;  %v628_v60 = vsel %vm2227_vm6, %v622_v27, %v624_v58  ;;  %vm2228_vm8 = vmmov %vm2203_vm1  ;;  %vm2230_vm1 = vcmp.lt.s32.totalorder %v1448_v18, 17  ;;  %v634_v30 = vsel %vm2231_vm7, %v627_v45, 0.0 }
 0x250   :  { %846 = vmatprep.subr.mxu0 %v784_v19  ;;  %v642_v11 = vpop.permute.xlu1 %641  ;;  %v785_v6 = vsel %vm2228_vm8, %v649_v32, %v749_v56  ;;  %v633_v24 = vsel %vm2234_vm3, %v628_v60, 0.0  ;;  %v738_v16 = vrot.slane %v634_v30, 4  ;;  %p1125_p5 = pnand %p1124_p4, %p1118_p1 }
 0x251   :  { %v643_v36 = vsel %vm2218_vm14, %v640_v1, %v642_v11  ;;  %v646_v55 = vsel %vm2219_vm10, %v642_v11, %v636_v59  ;;  %v608_v15 = vpop.permute.xlu0 %607  ;;  %vm2232_vm14 = vmmov %vm2230_vm1  ;;  %vm2233_vm10 = vnez %v2160_v7  ;;  %v737_v7 = vrot.slane %v633_v24, 4 }
 0x252   :  { %v647_v40 = vsel %vm2222_vm2, %v646_v55, 0.0  ;;  %v650_v14 = vsel %vm2223_vm15, %v643_v36, 0.0  ;;  %vm2236_vm2 = vmmov %vm2230_vm1 }
 0x253   :  { %v783_v38 = vsel %vm2225_vm9, %v647_v40, %v747_v43  ;;  %v786_v57 = vsel %vm2226_vm4, %v650_v14, %v750_v12  ;;  %vm2237_vm15 = vmmov %vm2230_vm1  ;;  %vm802_vm9 = vcmask 293888  }
 0x254   :  { %847 = vmatpush1.msra.mxu0 %v783_v38  ;;  %917 = vmatprep.subr.mxu1 %v786_v57  ;;  %v606_v5 = vpop.permute.xlu1 %605 }
 0x255   :  { %v613_v41 = vsel %vm2230_vm1, %v604_v35, %v606_v5  ;;  %918 = vmatpush1.msra.mxu1 %v785_v6  ;;  %v612_v0 = vsel %vm2232_vm14, %v606_v5, %v608_v15 }
 0x256   :  { %v616_v51 = vsel %vm2233_vm10, %v613_v41, 0.0  ;;  %v617_v26 = vsel %vm1801_vm0, %v612_v0, 0.0  ;;  %vm2239_vm0 = vmmov %vm2226_vm4 }
 0x257   :  { %v780_v52 = vsel %vm2235_vm12, %v616_v51, %v736_v31  ;;  %vm2240_vm6 = vmmov %vm2239_vm0 }
 0x258   :  { %848 = vmatprep.subr.mxu0 %v780_v52  ;;  %v610_v13 = vpop.permute.xlu1 %609  ;;  %v781_v18 = vsel %vm2240_vm6, %v617_v26, %v737_v7 }
 0x259   :  { %v611_v8 = vsel %vm2236_vm2, %v608_v15, %v610_v13  ;;  %v614_v3 = vsel %vm2237_vm15, %v610_v13, %v604_v35 }
 0x25a   :  { %v615_v53 = vsel %vm1784_vm5, %v614_v3, 0.0  ;;  %v618_v25 = vsel %vm2238_vm11, %v611_v8, 0.0 }
 0x25b   :  { %v779_v4 = vsel %vm2226_vm4, %v615_v53, %v735_v21  ;;  %v782_v46 = vsel %vm2239_vm0, %v618_v25, %v738_v16 }
 0x25c   :  { %849 = vmatpush1.msra.mxu0 %v779_v4  ;;  %919 = vmatprep.subr.mxu1 %v782_v46 }
 0x25d   :  { %1030 = vmatmul.mubr.msk.f32.vlgmr.msra.gmra.mxu0 %vm802_vm9, %v795_v22  ;;  %920 = vmatpush1.msra.mxu1 %v781_v18 }
 0x25e   :  { %1033 = vmatmul.mubr.msk.f32.vlgmr.msra.gmra.mxu1 %vm802_vm9, %v795_v22  ;;  %v800_v29 = vpop.permute.xlu0 %799 }
 0x31d   :  { %v884_v23 = vpop.f32.mrf.mxu0 }
 0x31e   :  { %v885_v9 = vadd.f32 %v884_v23, %v800_v29  ;;  %v955_v62 = vpop.f32.mrf.mxu1 }
 0x31f   :  { %v956_v58 = vadd.f32 %v955_v62, %v800_v29  ;;  %v886_v27 = vpop.f32.mrf.mxu0 }
 0x320   :  { %v887_v59 = vadd.f32 %v886_v27, %v800_v29  ;;  %v957_v47 = vpop.f32.mrf.mxu1  ;;  %v960_v1 = vmax.f32 %v885_v9, 0.0 }
 0x321   :  { %v958_v48 = vadd.f32 %v957_v47, %v800_v29  ;;  %v962_v49 = vmax.f32 %v956_v58, 0.0 }
 0x322   :  { %v961_v63 = vmax.f32 %v887_v59, 0.0 }
 0x323   :  { %v963_v37 = vmax.f32 %v958_v48, 0.0 }
 0x324   :  { %v966_v34 = vcombine.low %v960_v1, %v961_v63 }
 0x325   :  { %v971_v17 = vcombine.low %v962_v49, %v963_v37 }
 0x326   :  { %968 = vst [vmem:[#allocation8] sm:$0xff] %v966_v34 }
 0x327   :  { %974 = vst [vmem:[#allocation8 + $0x8] sm:$0xff] %v971_v17 }
 0x328   :  { %1128 = shalt.err (!%p1125_p5)
}
 0x329   :  { %986 = dma.vmem_to_hbm [thread:$0]  %s981_s15, 256, %s2063_s8, [#allocation4], %s1145_s10, %s1145_s10, %s1146_s11  }
 0x32a   :  { %1141 = dma.done.wait [#allocation4], 256  }
 0x32b   :  { %1142 = vsyncadd [#allocation4], 4294967040 }
 0x32c   :  { %990 = vsyncpa [#allocation3], 1 }
 0x32d   :  { %991 = vsyncpa [#allocation6], 1 }
 0x32e   :  { %992 = vsyncpa [#allocation4], 1 }

</bundles_post_ra>
